<compile_context>
chip_gen: v5e
topology: v5e:2x2
jax: 0.10.0
libtpu: 0.0.40
codegen_flags: <defaults>
</compile_context>

<pallas_src>
import functools
from dataclasses import dataclass

import jax
import jax.numpy as jnp
import numpy as np
from jax.experimental import pallas as pl
from jax.experimental.pallas import tpu as pltpu


_DEFAULT_VMEM_PHYS = 128 * 1024 * 1024


@functools.lru_cache(maxsize=None)
def _tpu_memory_config():
    """Generation-aware block / scoped-VMEM budgets.

    v7x-class (64 MiB physical VMEM): keep blocks big but cap scoped VMEM at ~40 MiB.
    v5e/v6e (128 MiB physical): raise the scoped limit to 64 MiB, 8 MiB blocks.
    Worst double-buffered footprint (scale-shift pass: x + out, 2 bufs each) stays well
    under the limit in both cases."""
    phys = _DEFAULT_VMEM_PHYS
    try:
        info = pltpu.get_tpu_info()
        phys = int(getattr(info, "vmem_capacity_bytes", phys)) or phys
    except Exception:
        pass
    if phys <= 64 * 1024 * 1024:
        return {"block_bytes": 6 * 1024 * 1024, "vmem_limit": 40 * 1024 * 1024}
    return {"block_bytes": 8 * 1024 * 1024, "vmem_limit": 64 * 1024 * 1024}


# ------------------------- tiling helpers -------------------------

def _sublane_multiple(itemsize):
    """Packed sublane tile: 8 rows for 4-byte, 16 for 2-byte, 32 for 1-byte dtypes."""
    return max(8, 32 // max(int(itemsize), 1))


def _pick_tile_rows(rows, lane, itemsize, max_block_bytes):
    """Largest row tile (multiple of the packed sublane tile, or the full extent) within
    the block budget.  VMEM pads the lane dim to 128 and compute is f32, so budget with
    max(lane, 128) * max(itemsize, 4) bytes per row."""
    sub = _sublane_multiple(itemsize)
    bytes_per_row = max(int(lane), 128) * max(int(itemsize), 4)
    t = max(sub, (int(max_block_bytes) // bytes_per_row) // sub * sub)
    return int(rows) if rows <= t else int(t)


def _fold_view_elementwise(x2):
    """Free lane-dense view for position-independent ops: (N, C) -> (N*C/128, 128)."""
    n, c = x2.shape
    total = n * c
    if c % 128 != 0 and total % 128 == 0 and total >= 128:
        return x2.reshape(total // 128, 128)
    # TODO(synk): ragged totals keep the (N, C) masked-store fallback; a flatten+tail
    # split adds an HBM slice/concat copy in XLA that cancels the lane-dense gain here.
    return x2


def _fold_view_groupnorm(x2):
    """Lane-dense view preserving channel alignment: requires C | 128 and 128 | N*C.
    Lane j of the folded view then always holds channel j % C (C is a power of two)."""
    n, c = x2.shape
    total = n * c
    if 0 < c < 128 and 128 % c == 0 and total % 128 == 0 and total >= 128:
        return x2.reshape(total // 128, 128), 128 // c
    return x2, 1


# ------------------------- Pallas kernels -------------------------

def _eltwise_kernel(x_ref, o_ref, *, fn, compute_in_f32):
    """Streaming elementwise activation on one row tile."""
    x = x_ref[...]
    if compute_in_f32:
        x = x.astype(jnp.float32)
    o_ref[...] = fn(x).astype(o_ref.dtype)


def _stats_kernel(x_ref, sum_ref, sq_ref, *, tile_rows, tiles_per_core, num_tiles,
                  n_valid, mask_last):
    """Per-lane sum / sum-of-squares over row tiles, accumulated directly into the
    grid-resident (1, 1, lane) output blocks.  The leading "parallel" core axis gives
    each v7x TensorCore its own DMA stream and partial-sum row (harmless serialization
    on 1-TC v5e/v6e)."""
    core = pl.program_id(0)
    i = pl.program_id(1)
    blk = core * tiles_per_core + i

    @pl.when(i == 0)
    def _():
        sum_ref[...] = jnp.zeros_like(sum_ref)
        sq_ref[...] = jnp.zeros_like(sq_ref)

    x = x_ref[...].astype(jnp.float32)

    if mask_last:
        last = num_tiles - 1

        @pl.when(blk != last)
        def _():
            sum_ref[...] += jnp.sum(x, axis=0, keepdims=True)
            sq_ref[...] += jnp.sum(x * x, axis=0, keepdims=True)

        @pl.when(blk == last)
        def _():
            rows = jax.lax.broadcasted_iota(jnp.int32, x.shape, 0) + blk * tile_rows
            xm = jnp.where(rows < n_valid, x, 0.0)   # mask only the padded tail rows
            sum_ref[...] += jnp.sum(xm, axis=0, keepdims=True)
            sq_ref[...] += jnp.sum(xm * xm, axis=0, keepdims=True)
    else:
        sum_ref[...] += jnp.sum(x, axis=0, keepdims=True)
        sq_ref[...] += jnp.sum(x * x, axis=0, keepdims=True)


def _scale_shift_kernel(x_ref, scale_ref, shift_ref, o_ref):
    """o = x * scale + shift (one FMA per element).  The last input block may contain
    garbage rows; Pallas clips partial output blocks on writeback so they never land."""
    x = x_ref[...].astype(jnp.float32)
    o_ref[...] = (x * scale_ref[...] + shift_ref[...]).astype(o_ref.dtype)


def _gn_fused_kernel(x_ref, gamma_ref, beta_ref, o_ref, *, n_total, c, eps):
    """Single-pass group norm with the whole (folded) values array resident in VMEM:
    1 HBM read + 1 HBM write, and a centered variance (x is resident, so the second
    sweep over VMEM is free) -- numerically stronger than E[x^2]-E[x]^2."""
    x = x_ref[...].astype(jnp.float32)                 # (rows, lane), no padding
    lane = x.shape[-1]
    inv_n = 1.0 / float(n_total)

    if lane != c:
        # Folded view: lane j holds channel j % c (c | 128 => power-of-two modulus).
        # Combine per-lane partials into per-channel totals broadcast back to lanes with
        # a tiny (1,lane)x(lane,lane) 0/1 matmul -- one MXU op on (1, 128) data.
        li = jax.lax.broadcasted_iota(jnp.int32, (lane, lane), 0) % c
        lj = jax.lax.broadcasted_iota(jnp.int32, (lane, lane), 1) % c
        mix = (li == lj).astype(jnp.float32)
        combine = lambda v: jnp.dot(v, mix, preferred_element_type=jnp.float32)
    else:
        combine = lambda v: v

    mean = combine(jnp.sum(x, axis=0, keepdims=True)) * inv_n
    xc = x - mean
    var = combine(jnp.sum(xc * xc, axis=0, keepdims=True)) * inv_n
    scale = gamma_ref[...] * jax.lax.rsqrt(var + eps)
    o_ref[...] = (xc * scale + beta_ref[...]).astype(o_ref.dtype)


# ------------------------- Wrappers -------------------------

def pallas_elementwise(fn, values, *, max_block_bytes=None, compute_in_f32=False):
    """Apply an elementwise activation `fn` to a (N, C) array in one streaming Pallas
    pass, using a lane-dense (N*C/128, 128) view whenever the reshape is free.
    compute_in_f32: upcast before `fn` (keep True for transcendentals on v5e, which has
    no bf16 VALU); dtype-preserving ops like ReLU compute natively on v6e/v7x."""
    cfg = _tpu_memory_config()
    if max_block_bytes is None:
        max_block_bytes = cfg["block_bytes"]
    n, c = values.shape
    x2d = _fold_view_elementwise(values)
    rows, lane = x2d.shape
    tile_rows = _pick_tile_rows(rows, lane, jnp.dtype(values.dtype).itemsize, max_block_bytes)
    num_tiles = pl.cdiv(rows, tile_rows)

    out2d = pl.pallas_call(
        functools.partial(_eltwise_kernel, fn=fn, compute_in_f32=compute_in_f32),
        out_shape=jax.ShapeDtypeStruct((rows, lane), values.dtype),
        grid_spec=pltpu.PrefetchScalarGridSpec(
            num_scalar_prefetch=0,
            grid=(num_tiles,),
            in_specs=[pl.BlockSpec((tile_rows, lane), lambda i: (i, 0))],
            out_specs=pl.BlockSpec((tile_rows, lane), lambda i: (i, 0))),
        compiler_params=pltpu.CompilerParams(
            dimension_semantics=("parallel",),      # auto-shards across v7x's 2 TCs
            vmem_limit_bytes=cfg["vmem_limit"]),
    )(x2d)
    return out2d.reshape(n, c)


def pallas_relu(values):
    return pallas_elementwise(lambda v: jnp.maximum(v, 0.0), values, compute_in_f32=False)


def sparse_group_norm_values(values, gamma, beta, *, eps=1e-5, affine=True,
                             max_block_bytes=None, allow_fused=True):
    """Per-channel group norm over all stored entries of a sparse matrix.

    values: (N, C).  Matches torch.var_mean(values, dim=0, unbiased=False) followed by
    gamma * (values - mean) / sqrt(var + eps) + beta."""
    cfg = _tpu_memory_config()
    if max_block_bytes is None:
        max_block_bytes = cfg["block_bytes"]
    vmem_limit = cfg["vmem_limit"]

    n, c = values.shape
    x2d, fold = _fold_view_groupnorm(values)
    rows, lane = x2d.shape
    itemsize = jnp.dtype(values.dtype).itemsize

    gamma_f = gamma.astype(jnp.float32)
    beta_f = beta.astype(jnp.float32) if affine else jnp.zeros((c,), jnp.float32)

    # ---- Fused single-pass path: whole (folded) array comfortably fits in VMEM. ----
    f32_bytes = rows * max(lane, 128) * 4
    if allow_fused and f32_bytes * 8 <= vmem_limit:
        gamma_l = jnp.tile(gamma_f, fold).reshape(1, lane)
        beta_l = jnp.tile(beta_f, fold).reshape(1, lane)
        out2d = pl.pallas_call(
            functools.partial(_gn_fused_kernel, n_total=n, c=c, eps=eps),
            out_shape=jax.ShapeDtypeStruct((rows, lane), values.dtype),
            compiler_params=pltpu.CompilerParams(vmem_limit_bytes=vmem_limit),
        )(x2d, gamma_l, beta_l)
        return out2d.reshape(n, c)

    # ---- Streaming two-pass path (large arrays). ----
    tile_rows = _pick_tile_rows(rows, lane, itemsize, max_block_bytes)
    num_tiles = pl.cdiv(rows, tile_rows)
    mask_last = (rows % tile_rows) != 0
    # 2-way split of the reduction across a leading "parallel" core axis when it divides
    # evenly (v7x gets one DMA stream + partial row per TC; negligible cost elsewhere).
    num_cores = 2 if (num_tiles % 2 == 0 and num_tiles >= 4) else 1
    tiles_per_core = num_tiles // num_cores

    # Pass 1: per-lane sums / sums-of-squares, accumulated in grid-resident outputs.
    # (If profiling shows exposed DMA here, add pipeline_mode=pl.Buffered(3) to in_specs.)
    sums, sqs = pl.pallas_call(
        functools.partial(_stats_kernel, tile_rows=tile_rows,
                          tiles_per_core=tiles_per_core, num_tiles=num_tiles,
                          n_valid=rows, mask_last=mask_last),
        out_shape=(jax.ShapeDtypeStruct((num_cores, 1, lane), jnp.float32),
                   jax.ShapeDtypeStruct((num_cores, 1, lane), jnp.float32)),
        grid_spec=pltpu.PrefetchScalarGridSpec(
            num_scalar_prefetch=0,
            grid=(num_cores, tiles_per_core),
            in_specs=[pl.BlockSpec((tile_rows, lane),
                                   lambda cr, i: (cr * tiles_per_core + i, 0))],
            out_specs=(pl.BlockSpec((1, 1, lane), lambda cr, i: (cr, 0, 0)),
                       pl.BlockSpec((1, 1, lane), lambda cr, i: (cr, 0, 0)))),
        compiler_params=pltpu.CompilerParams(
            dimension_semantics=("parallel", "arbitrary"),
            vmem_limit_bytes=vmem_limit),
    )(x2d)

    # O(C) epilogue in plain JAX: combine core partials, fold lanes back to channels.
    # NOTE: streaming path uses E[x^2]-E[x]^2 (clamped >= 0); the fused path above uses
    # the centered formulation.  TODO(synk): shifted/Welford variant if tighter agreement
    # is ever required for huge-N, high-|mean| data.
    sums_l = jnp.sum(sums, axis=0).reshape(lane)
    sqs_l = jnp.sum(sqs, axis=0).reshape(lane)
    sums_c = sums_l.reshape(fold, c).sum(axis=0)
    sqs_c = sqs_l.reshape(fold, c).sum(axis=0)
    mean = sums_c / n
    var = jnp.maximum(sqs_c / n - mean * mean, 0.0)
    scale = gamma_f * jax.lax.rsqrt(var + eps)
    shift = beta_f - mean * scale
    scale_l = jnp.tile(scale, fold).reshape(1, lane)
    shift_l = jnp.tile(shift, fold).reshape(1, lane)

    # Pass 2: streaming FMA normalize (lane-dense blocks; auto-sharded across TCs).
    out2d = pl.pallas_call(
        _scale_shift_kernel,
        out_shape=jax.ShapeDtypeStruct((rows, lane), values.dtype),
        grid_spec=pltpu.PrefetchScalarGridSpec(
            num_scalar_prefetch=0,
            grid=(num_tiles,),
            in_specs=[pl.BlockSpec((tile_rows, lane), lambda i: (i, 0)),
                      pl.BlockSpec((1, lane), lambda i: (0, 0)),
                      pl.BlockSpec((1, lane), lambda i: (0, 0))],
            out_specs=pl.BlockSpec((tile_rows, lane), lambda i: (i, 0))),
        compiler_params=pltpu.CompilerParams(
            dimension_semantics=("parallel",),
            vmem_limit_bytes=vmem_limit),
    )(x2d, scale_l, shift_l)
    return out2d.reshape(n, c)


# ------------------------- Module glue (plain Python / JAX) -------------------------

@dataclass
class Schema:
    relations: list


@dataclass
class SparseMatrix:
    indices: jnp.ndarray   # (N, 2) row/col indices (carried through untouched)
    values: jnp.ndarray    # (N, C)
    shape: tuple


class SparseMatrixGroupNorm:
    """Per-channel group norm over sparse values (num_groups == num_channels),
    callable on a values array so it can be used as an `Activation` entry."""

    def __init__(self, num_groups, num_channels, eps=1e-5, affine=True, key=None,
                 max_block_bytes=None, allow_fused=True):
        assert num_groups == num_channels, "Only implemented for num_groups == num_channels"
        self.eps = eps
        self.num_channels = num_channels
        self.affine = affine
        self.max_block_bytes = max_block_bytes
        self.allow_fused = allow_fused
        if key is None:
            key = jax.random.PRNGKey(0)
        kg, kb = jax.random.split(key)
        # ones/zeros perturbed deterministically so the affine path is exercised.
        self.gamma = jnp.ones((num_channels,), jnp.float32) + 0.1 * jax.random.normal(kg, (num_channels,))
        self.beta = (0.1 * jax.random.normal(kb, (num_channels,)) if affine
                     else jnp.zeros((num_channels,), jnp.float32))

    def __call__(self, values):
        return sparse_group_norm_values(values, self.gamma, self.beta,
                                        eps=self.eps, affine=self.affine,
                                        max_block_bytes=self.max_block_bytes,
                                        allow_fused=self.allow_fused)


class Activation:
    """Pallas/JAX port of the PyTorch `Activation` wrapper: applies an activation to
    each relation in the schema that is present in X (to .values when is_sparse)."""
    # TODO(synk): batch relations sharing the same activation/dtype into one pallas_call
    # (scalar-prefetched per-relation offsets, MoE-style) to amortize launch overhead.

    def __init__(self, schema, activation, is_dict=False, is_sparse=False):
        self.schema = schema
        self.activation = activation
        self.is_dict = is_dict
        self.is_sparse = is_sparse

    def __call__(self, X):
        for rel_id in self.schema.relations:
            if rel_id in X:
                if self.is_dict:
                    activation = self.activation[str(rel_id)]
                else:
                    activation = self.activation
                if self.is_sparse:
                    X[rel_id].values = activation(X[rel_id].values)
                else:
                    X[rel_id] = activation(X[rel_id])
        return X


# ------------------------- Demo / check -------------------------

if __name__ == "__main__":
    keys = jax.random.split(jax.random.PRNGKey(0), 10)

    # Relation 9 is in the schema but absent from X -> exercises the skip branch.
    schema = Schema(relations=[0, 1, 2, 3, 4, 9])

    # rel 0: ReLU, 50x8 (400 elems, not a multiple of 128) -> masked fallback, one tile.
    v0 = jax.random.normal(keys[0], (50, 8), dtype=jnp.float32) * 2.0 + 0.5
    # rel 1: GN, 480x8 -> lane-dense fold (30,128); forced streaming two-pass with tiny
    #        blocks -> 4 row tiles -> 2-way core-split stats pass + last-tile masking.
    v1 = jax.random.normal(keys[1], (480, 8), dtype=jnp.float32) * 1.5 - 0.25
    # rel 2: GN, 100x4 -> narrow-lane fallback; forced two-pass, 13 tiles, masked tail.
    v2 = jax.random.normal(keys[2], (100, 4), dtype=jnp.float32) * 3.0 + 1.0
    # rel 3: GN, 64x8 -> fused single-pass on the lane-dense fold (4,128).
    v3 = jax.random.normal(keys[3], (64, 8), dtype=jnp.float32) * 1.2 + 0.3
    # rel 4: GN, 37x12 -> fused single-pass, unfolded (ragged) lanes.
    v4 = jax.random.normal(keys[4], (37, 12), dtype=jnp.float32) * 0.7 - 1.0

    X = {
        0: SparseMatrix(indices=jax.random.randint(keys[5], (50, 2), 0, 32), values=v0, shape=(32, 32)),
        1: SparseMatrix(indices=jnp.zeros((480, 2), jnp.int32), values=v1, shape=(64, 64)),
        2: SparseMatrix(indices=jnp.zeros((100, 2), jnp.int32), values=v2, shape=(64, 64)),
        3: SparseMatrix(indices=jnp.zeros((64, 2), jnp.int32), values=v3, shape=(64, 64)),
        4: SparseMatrix(indices=jnp.zeros((37, 2), jnp.int32), values=v4, shape=(16, 16)),
    }

    gn1 = SparseMatrixGroupNorm(8, 8, key=keys[6], max_block_bytes=4096, allow_fused=False)
    gn2 = SparseMatrixGroupNorm(4, 4, key=keys[7], max_block_bytes=4096, allow_fused=False)
    gn3 = SparseMatrixGroupNorm(8, 8, key=keys[8])
    gn4 = SparseMatrixGroupNorm(12, 12, key=keys[9])
    act = Activation(schema, {"0": pallas_relu, "1": gn1, "2": gn2, "3": gn3, "4": gn4},
                     is_dict=True, is_sparse=True)

    out = act(X)
    jax.block_until_ready([out[r].values for r in (0, 1, 2, 3, 4)])

    # Dense (is_sparse=False) path: exact lane-dense fold (24*16 = 3*128).
    xd = jax.random.normal(jax.random.PRNGKey(42), (24, 16), dtype=jnp.float32)
    act_dense = Activation(Schema(relations=[0]), pallas_relu, is_dict=False, is_sparse=False)
    outd = act_dense({0: xd})
    jax.block_until_ready(outd[0])

    # ---- Pure-JAX references ----
    def gn_ref(v, gamma, beta, eps=1e-5):
        m = jnp.mean(v, axis=0)
        var = jnp.mean((v - m) ** 2, axis=0)
        return gamma * (v - m) / jnp.sqrt(var + eps) + beta

    np.testing.assert_allclose(np.asarray(out[0].values), np.maximum(np.asarray(v0), 0.0),
                               rtol=1e-6, atol=1e-6)
    for rid, v, gn in ((1, v1, gn1), (2, v2, gn2), (3, v3, gn3), (4, v4, gn4)):
        np.testing.assert_allclose(np.asarray(out[rid].values),
                                   np.asarray(gn_ref(v, gn.gamma, gn.beta)),
                                   rtol=1e-5, atol=3e-5)
        assert out[rid].values.shape == v.shape and out[rid].values.dtype == v.dtype
    np.testing.assert_allclose(np.asarray(outd[0]), np.maximum(np.asarray(xd), 0.0),
                               rtol=1e-6, atol=1e-6)

    print("KERNEL_OK")
</pallas_src>

<mosaic_0001>
module attributes {stable_mosaic.version = 11 : i64} {
  func.func @_eltwise_kernel(%arg0: i32, %arg1: memref<50x8xf32, #tpu.memory_space<vmem>>, %arg2: memref<50x8xf32, #tpu.memory_space<vmem>>) attributes {dimension_semantics = [#tpu.dimension_semantics<parallel>], iteration_bounds = array<i64: 1>, scalar_prefetch = 0 : i64, scratch_operands = 0 : i64, tpu.core_type = #tpu.core_type<tc>, window_params = [{transform_indices = @transform_0, window_bounds = array<i64: 50, 8>}, {transform_indices = @transform_1, window_bounds = array<i64: 50, 8>}]} {
    %c0 = arith.constant 0 : index
    %c0_0 = arith.constant 0 : index
    %0 = vector.load %arg1[%c0, %c0_0] : memref<50x8xf32, #tpu.memory_space<vmem>>, vector<50x8xf32>
    %cst = arith.constant 0.000000e+00 : f32
    %1 = vector.broadcast %cst : f32 to vector<50x8xf32>
    %2 = arith.maximumf %0, %1 : vector<50x8xf32>
    %c0_1 = arith.constant 0 : index
    %c0_2 = arith.constant 0 : index
    %3 = vector.load %arg2[%c0_1, %c0_2] : memref<50x8xf32, #tpu.memory_space<vmem>>, vector<50x8xf32>
    tpu.vector_store %arg2[%c0_1, %c0_2], %2 {strides = array<i32>} : memref<50x8xf32, #tpu.memory_space<vmem>>, vector<50x8xf32>,
    return
  }
  func.func @transform_0(%arg0: i32) -> (i32, i32) {
    %c0_i32 = arith.constant 0 : i32
    %c0_i32_0 = arith.constant 0 : i32
    return %arg0, %c0_i32 : i32, i32
  }
  func.func @transform_1(%arg0: i32) -> (i32, i32) {
    %c0_i32 = arith.constant 0 : i32
    %c0_i32_0 = arith.constant 0 : i32
    return %arg0, %c0_i32 : i32, i32
  }
}

</mosaic_0001>

<bundles_post_ra>
// kernel: tpu_custom_call.1
= control target key start
LH: loop header
LB: loop body
LE: loop exit
PB: predicated region body
PF: predicated region fallthrough
CT: control target
= control target key end

     0   :  { %vm22_vm0 = vcmask 64512   ;;  %vm29_vm1 = vcmask 58368   ;;  %s93_s0 = inlined_call_operand.vmem [shape: f32[50,8], index: 0, kind: input, shape index: {}]   ;;  %s94_s1 = inlined_call_operand.vmem [shape: f32[50,8], index: 1, kind: output, shape index: {}]  }
   0x1   :  { %v8_v0 = vld [vmem:[%s93_s0] sm:$0xff]  ;;  %v9_v1 = vld [vmem:[%s93_s0 + $0x8] sm:$0xff]  ;;  %v10_v2 = vld [vmem:[%s93_s0 + $0x10] sm:$0xff] }
   0x2   :  { %v15_v3 = vmax.f32 %v8_v0, 0.0  ;;  %v16_v4 = vmax.f32 %v9_v1, 0.0  ;;  %v17_v5 = vmax.f32 %v10_v2, 0.0  ;;  %v11_v6 = vld [vmem:[%s93_s0 + $0x18] sm:$0xff]  ;;  %v12_v7 = vld [vmem:[%s93_s0 + $0x20] sm:$0xff]  ;;  %v13_v8 = vld [vmem:[%s93_s0 + $0x28] sm:$0xff] }
   0x3   :  { %v18_v9 = vmax.f32 %v11_v6, 0.0  ;;  %v14_v10 = vld [vmem:[%s93_s0 + $0x30] sm:$0x3]  ;;  %v19_v11 = vmax.f32 %v12_v7, 0.0  ;;  %v20_v12 = vmax.f32 %v13_v8, 0.0 }
   0x4   :  { %23 = vst.msk [vmem:[%s94_s1] sm:$0xff] %vm22_vm0, %v15_v3  ;;  %v21_v13 = vmax.f32 %v14_v10, 0.0 }
   0x5   :  { %24 = vst.msk [vmem:[%s94_s1 + $0x8] sm:$0xff] %vm22_vm0, %v16_v4 }
   0x6   :  { %25 = vst.msk [vmem:[%s94_s1 + $0x10] sm:$0xff] %vm22_vm0, %v17_v5 }
   0x7   :  { %26 = vst.msk [vmem:[%s94_s1 + $0x18] sm:$0xff] %vm22_vm0, %v18_v9 }
   0x8   :  { %27 = vst.msk [vmem:[%s94_s1 + $0x20] sm:$0xff] %vm22_vm0, %v19_v11 }
   0x9   :  { %28 = vst.msk [vmem:[%s94_s1 + $0x28] sm:$0xff] %vm22_vm0, %v20_v12 }
   0xa   :  { %30 = vst.msk [vmem:[%s94_s1 + $0x30] sm:$0x3] %vm29_vm1, %v21_v13 }

</bundles_post_ra>
